<compile_context>
chip_gen: v5e
topology: v5e:2x2
jax: 0.10.0
libtpu: 0.0.40
codegen_flags: <defaults>
</compile_context>

<pallas_src>
import functools

import jax
import jax.numpy as jnp
import numpy as np
from jax import lax
from jax.experimental import pallas as pl
from jax.experimental.pallas import tpu as pltpu

GN_GROUPS = 32
GN_EPS = 1e-5


def _silu(x):
    # x * sigmoid(x); exp goes to the EUP slot.
    return x * (1.0 / (1.0 + jnp.exp(-x)))


def _finalize_scale_shift(ss, gmat, gamma, beta, count):
    """ss: (2, C) accumulated [sum; sumsq] -> (2, C) [scale; shift] for GN."""
    # Per-group sums broadcast back per channel via a (C, C) group-membership
    # matmul (avoids lane-dim reshapes; one tiny MXU op at finalize only).
    agg = jnp.dot(ss, gmat, preferred_element_type=jnp.float32)       # (2, C)
    inv_count = 1.0 / count
    mean = agg[0:1] * inv_count
    var = agg[1:2] * inv_count - mean * mean
    rstd = lax.rsqrt(var + GN_EPS)
    scale = rstd * gamma
    shift = beta - mean * scale
    return jnp.concatenate([scale, shift], axis=0)


def _norm_silu_conv_tile(top, mid, bot, ss, wmat, top_mask, bot_mask):
    """GroupNorm (folded scale/shift) + SiLU + 3x3 conv (padding=1) on one row
    tile.  top/bot are 1-row halos; at true image edges they are multiplied by
    0 *after* norm+SiLU, which reproduces the conv's zero padding exactly.
    Returns the (TH*W, Cout) f32 conv output (no bias)."""
    th, width, cin = mid.shape
    scale = ss[0:1].reshape(1, 1, cin)
    shift = ss[1:2].reshape(1, 1, cin)

    def norm_act(v):
        return _silu(v.astype(jnp.float32) * scale + shift)

    win = jnp.concatenate(
        [norm_act(top) * top_mask, norm_act(mid), norm_act(bot) * bot_mask],
        axis=0)                                           # (TH+2, W, Cin)
    zcol = jnp.zeros((th + 2, 1, cin), jnp.float32)
    winp = jnp.concatenate([zcol, win, zcol], axis=1)     # (TH+2, W+2, Cin)

    # im2col: one K = 9*Cin MXU matmul instead of 9 K = Cin pushes.
    cols = [winp[kh:kh + th, kw:kw + width, :].reshape(th * width, cin)
            for kh in range(3) for kw in range(3)]
    patches = jnp.concatenate(cols, axis=-1)              # (TH*W, 9*Cin)
    return jnp.dot(patches.astype(wmat.dtype), wmat,
                   preferred_element_type=jnp.float32)


# --------------------------- kernels ---------------------------------------

def _gn_stats_kernel(x_ref, gamma_ref, beta_ref, gmat_ref, ss_ref, *, count):
    """Accumulate per-channel sum/sumsq of x across row tiles; on the last row
    tile convert to per-channel GroupNorm (scale, shift)."""
    rt = pl.program_id(1)
    nrt = pl.num_programs(1)

    @pl.when(rt == 0)
    def _():
        ss_ref[...] = jnp.zeros_like(ss_ref)

    th, width, c = x_ref.shape[1], x_ref.shape[2], x_ref.shape[3]
    xt = x_ref[0].reshape(th * width, c).astype(jnp.float32)
    s = jnp.sum(xt, axis=0, keepdims=True)
    q = jnp.sum(xt * xt, axis=0, keepdims=True)
    ss_ref[0] = ss_ref[0] + jnp.concatenate([s, q], axis=0)

    @pl.when(rt == nrt - 1)
    def _():
        ss_ref[0] = _finalize_scale_shift(ss_ref[0], gmat_ref[...],
                                          gamma_ref[...], beta_ref[...], count)


def _gn_silu_conv_kernel(x_top_ref, x_mid_ref, x_bot_ref, ss1_ref, w_ref,
                         emb_ref, gamma2_ref, beta2_ref, gmat_ref,
                         h_ref, ss2_ref, *, count):
    """GN1 + SiLU + conv1 + (bias folded into emb) + emb -> h, with GN2
    statistics fused into the epilogue (saves one full HBM pass over h)."""
    rt = pl.program_id(1)
    nrt = pl.num_programs(1)

    @pl.when(rt == 0)
    def _():
        ss2_ref[...] = jnp.zeros_like(ss2_ref)

    top_mask = (rt != 0).astype(jnp.float32)
    bot_mask = (rt != nrt - 1).astype(jnp.float32)
    acc = _norm_silu_conv_tile(x_top_ref[0], x_mid_ref[0], x_bot_ref[0],
                               ss1_ref[0], w_ref[...], top_mask, bot_mask)
    acc = acc + emb_ref[0]                                # (TH*W, Cout)

    th, width, cout = h_ref.shape[1], h_ref.shape[2], h_ref.shape[3]
    h_ref[0] = acc.reshape(th, width, cout).astype(h_ref.dtype)

    # fused partial GroupNorm-2 statistics of h
    s = jnp.sum(acc, axis=0, keepdims=True)
    q = jnp.sum(acc * acc, axis=0, keepdims=True)
    ss2_ref[0] = ss2_ref[0] + jnp.concatenate([s, q], axis=0)

    @pl.when(rt == nrt - 1)
    def _():
        ss2_ref[0] = _finalize_scale_shift(ss2_ref[0], gmat_ref[...],
                                           gamma2_ref[...], beta2_ref[...],
                                           count)


def _gn_silu_conv_res_kernel(h_top_ref, h_mid_ref, h_bot_ref, ss2_ref, w_ref,
                             b_ref, res_ref, o_ref):
    """GN2 + SiLU + (eval-mode dropout = identity) + conv2 + bias + residual."""
    rt = pl.program_id(1)
    nrt = pl.num_programs(1)
    top_mask = (rt != 0).astype(jnp.float32)
    bot_mask = (rt != nrt - 1).astype(jnp.float32)
    acc = _norm_silu_conv_tile(h_top_ref[0], h_mid_ref[0], h_bot_ref[0],
                               ss2_ref[0], w_ref[...], top_mask, bot_mask)
    acc = acc + b_ref[...]
    th, width, cout = o_ref.shape[1], o_ref.shape[2], o_ref.shape[3]
    o_ref[0] = (res_ref[0].astype(jnp.float32)
                + acc.reshape(th, width, cout)).astype(o_ref.dtype)


def _emb_kernel(emb_ref, w_ref, b_ref, o_ref):
    """emb_layers: SiLU + Linear (+ conv1 bias folded in); tiny single-step."""
    e = _silu(emb_ref[...].astype(jnp.float32))
    o_ref[...] = (jnp.dot(e, w_ref[...], preferred_element_type=jnp.float32)
                  + b_ref[...]).astype(o_ref.dtype)


# --------------------------- wrapper ----------------------------------------

def _pick_row_tile(H, W, Cin, Cout, budget_bytes=20 * 1024 * 1024):
    """Largest divisor TH of H whose per-step working set (double-buffered
    tiles + im2col scratch + weights) fits the VMEM budget."""
    best = 1
    for th in range(H, 0, -1):
        if H % th:
            continue
        tile_in = (th + 2) * W * Cin * 4
        tile_out = th * W * Cout * 4
        win = 2 * (th + 2) * (W + 2) * Cin * 4
        patches = th * W * 9 * Cin * 4
        acc = th * W * Cout * 4
        weights = 9 * Cin * Cout * 4 * 2 + Cin * Cin * 4 * 2
        total = 2 * (tile_in + tile_out) + win + patches + acc + weights
        if total <= budget_bytes:
            best = th
            break
    return best


def resblock_forward(x_nchw, emb, params, *, row_tile=None,
                     matmul_dtype=jnp.float32):
    """ResBlock._forward, default configuration. NCHW in / NCHW out."""
    f32 = jnp.float32
    N, C, H, W = x_nchw.shape
    Cout = params["conv1_w"].shape[0]
    assert Cout == C          # identity skip; TODO(synk): conv skip variants
    assert C % GN_GROUPS == 0
    if row_tile is None:
        TH = _pick_row_tile(H, W, C, Cout)
    else:
        TH = row_tile if (H % row_tile == 0) else H
    nrt = H // TH
    cg = C // GN_GROUPS
    count = float(H * W * cg)

    # Single layout pass to channels-last (C on the lane axis); back once at end.
    x = jnp.transpose(x_nchw, (0, 2, 3, 1))                       # (N, H, W, C)

    # One-time parameter repacking (tiny).
    w1 = jnp.transpose(params["conv1_w"], (2, 3, 1, 0)).reshape(9 * C, Cout)
    w2 = jnp.transpose(params["conv2_w"], (2, 3, 1, 0)).reshape(9 * Cout, Cout)
    w1 = w1.astype(matmul_dtype)
    w2 = w2.astype(matmul_dtype)
    b2 = params["conv2_b"].reshape(1, Cout).astype(f32)
    g1 = params["gn1_w"].reshape(1, C).astype(f32)
    be1 = params["gn1_b"].reshape(1, C).astype(f32)
    g2 = params["gn2_w"].reshape(1, Cout).astype(f32)
    be2 = params["gn2_b"].reshape(1, Cout).astype(f32)
    gids = np.arange(C) // cg
    gmat = jnp.asarray((gids[:, None] == gids[None, :]).astype(np.float32))

    # emb_layers: SiLU + Linear, with conv1 bias folded into the bias term.
    w_emb_t = jnp.transpose(params["emb_w"]).astype(f32)          # (E, Cout)
    b_emb = (params["emb_b"] + params["conv1_b"]).reshape(1, Cout).astype(f32)
    emb_out = pl.pallas_call(
        _emb_kernel,
        out_shape=jax.ShapeDtypeStruct((N, Cout), f32),
    )(emb.astype(f32), w_emb_t, b_emb)
    emb_out = emb_out.reshape(N, 1, Cout)

    cp_acc = pltpu.CompilerParams(
        dimension_semantics=("parallel", "arbitrary"),
        vmem_limit_bytes=32 * 1024 * 1024)
    cp_par = pltpu.CompilerParams(
        dimension_semantics=("parallel", "parallel"),
        vmem_limit_bytes=32 * 1024 * 1024)

    tile_map = lambda n, r: (n, r, 0, 0)
    top_map = lambda n, r: (n, jnp.maximum(r * TH - 1, 0), 0, 0)
    bot_map = lambda n, r: (n, jnp.minimum(r * TH + TH, H - 1), 0, 0)
    const2 = lambda n, r: (0, 0)
    per_n3 = lambda n, r: (n, 0, 0)

    # ---- kernel A: GroupNorm-1 statistics -> per-channel (scale, shift) ----
    ss1 = pl.pallas_call(
        functools.partial(_gn_stats_kernel, count=count),
        out_shape=jax.ShapeDtypeStruct((N, 2, C), f32),
        grid_spec=pltpu.PrefetchScalarGridSpec(
            num_scalar_prefetch=0, grid=(N, nrt),
            in_specs=[
                pl.BlockSpec((1, TH, W, C), tile_map),
                pl.BlockSpec((1, C), const2),
                pl.BlockSpec((1, C), const2),
                pl.BlockSpec((C, C), const2),
            ],
            out_specs=pl.BlockSpec((1, 2, C), per_n3),
        ),
        compiler_params=cp_acc,
    )(x, g1, be1, gmat)

    # ---- kernel B: GN1+SiLU+conv1+(b1+emb) -> h ; fused GN2 statistics -----
    h1, ss2 = pl.pallas_call(
        functools.partial(_gn_silu_conv_kernel, count=count),
        out_shape=(jax.ShapeDtypeStruct((N, H, W, Cout), f32),
                   jax.ShapeDtypeStruct((N, 2, Cout), f32)),
        grid_spec=pltpu.PrefetchScalarGridSpec(
            num_scalar_prefetch=0, grid=(N, nrt),
            in_specs=[
                pl.BlockSpec((1, 1, W, C), top_map),
                pl.BlockSpec((1, TH, W, C), tile_map),
                pl.BlockSpec((1, 1, W, C), bot_map),
                pl.BlockSpec((1, 2, C), per_n3),
                pl.BlockSpec((9 * C, Cout), const2),
                pl.BlockSpec((1, 1, Cout), per_n3),
                pl.BlockSpec((1, Cout), const2),
                pl.BlockSpec((1, Cout), const2),
                pl.BlockSpec((Cout, Cout), const2),
            ],
            out_specs=[
                pl.BlockSpec((1, TH, W, Cout), tile_map),
                pl.BlockSpec((1, 2, Cout), per_n3),
            ],
        ),
        compiler_params=cp_acc,
    )(x, x, x, ss1, w1, emb_out, g2, be2, gmat)

    # ---- kernel C: GN2+SiLU+conv2+b2 + residual (identity skip) ------------
    out_nhwc = pl.pallas_call(
        _gn_silu_conv_res_kernel,
        out_shape=jax.ShapeDtypeStruct((N, H, W, Cout), x_nchw.dtype),
        grid_spec=pltpu.PrefetchScalarGridSpec(
            num_scalar_prefetch=0, grid=(N, nrt),
            in_specs=[
                pl.BlockSpec((1, 1, W, Cout), top_map),
                pl.BlockSpec((1, TH, W, Cout), tile_map),
                pl.BlockSpec((1, 1, W, Cout), bot_map),
                pl.BlockSpec((1, 2, Cout), per_n3),
                pl.BlockSpec((9 * Cout, Cout), const2),
                pl.BlockSpec((1, Cout), const2),
                pl.BlockSpec((1, TH, W, C), tile_map),
            ],
            out_specs=pl.BlockSpec((1, TH, W, Cout), tile_map),
        ),
        compiler_params=cp_par,
    )(h1, h1, h1, ss2, w2, b2, x)

    return jnp.transpose(out_nhwc, (0, 3, 1, 2))          # back to NCHW


# --------------------------- reference & test --------------------------------

def _reference(x, emb, params):
    f32 = jnp.float32

    def gn(t, g, b):
        n, c, h, w = t.shape
        tr = t.reshape(n, GN_GROUPS, c // GN_GROUPS, h, w).astype(f32)
        mean = tr.mean(axis=(2, 3, 4), keepdims=True)
        var = tr.var(axis=(2, 3, 4), keepdims=True)
        tn = ((tr - mean) * lax.rsqrt(var + GN_EPS)).reshape(n, c, h, w)
        return tn * g.reshape(1, c, 1, 1) + b.reshape(1, c, 1, 1)

    def conv3(t, w, b):
        y = lax.conv_general_dilated(
            t, w, (1, 1), ((1, 1), (1, 1)),
            dimension_numbers=("NCHW", "OIHW", "NCHW"),
            precision=lax.Precision.HIGHEST)
        return y + b.reshape(1, -1, 1, 1)

    h = conv3(_silu(gn(x, params["gn1_w"], params["gn1_b"])),
              params["conv1_w"], params["conv1_b"])
    e = _silu(emb) @ params["emb_w"].T + params["emb_b"]
    h = h + e[:, :, None, None]
    h = conv3(_silu(gn(h, params["gn2_w"], params["gn2_b"])),
              params["conv2_w"], params["conv2_b"])
    return x + h


if __name__ == "__main__":
    key = jax.random.PRNGKey(0)
    ks = jax.random.split(key, 12)

    # Small shapes consistent with the module (GroupNorm32 needs C % 32 == 0;
    # C = 128 keeps the channel/lane axis dense, as in real UNet ResBlocks).
    N, C, H, W = 2, 128, 16, 16
    E = 64                     # emb_channels
    Cout = C                   # default out_channels -> identity skip

    x = jax.random.normal(ks[0], (N, C, H, W), jnp.float32)
    emb = jax.random.normal(ks[1], (N, E), jnp.float32)

    params = dict(
        gn1_w=1.0 + 0.1 * jax.random.normal(ks[2], (C,), jnp.float32),
        gn1_b=0.1 * jax.random.normal(ks[3], (C,), jnp.float32),
        conv1_w=0.05 * jax.random.normal(ks[4], (Cout, C, 3, 3), jnp.float32),
        conv1_b=0.05 * jax.random.normal(ks[5], (Cout,), jnp.float32),
        emb_w=0.1 * jax.random.normal(ks[6], (Cout, E), jnp.float32),
        emb_b=0.1 * jax.random.normal(ks[7], (Cout,), jnp.float32),
        gn2_w=1.0 + 0.1 * jax.random.normal(ks[8], (Cout,), jnp.float32),
        gn2_b=0.1 * jax.random.normal(ks[9], (Cout,), jnp.float32),
        # NOTE: the PyTorch module zero-inits conv2 (zero_module); random
        # weights here so the test actually exercises the second conv.
        conv2_w=0.05 * jax.random.normal(ks[10], (Cout, Cout, 3, 3), jnp.float32),
        conv2_b=0.05 * jax.random.normal(ks[11], (Cout,), jnp.float32),
    )

    out = jax.block_until_ready(resblock_forward(x, emb, params))
    ref = jax.block_until_ready(_reference(x, emb, params))

    assert out.shape == (N, Cout, H, W), out.shape
    np.testing.assert_allclose(np.asarray(out), np.asarray(ref),
                               rtol=1e-3, atol=1e-3)
    print("KERNEL_OK")
</pallas_src>

<mosaic_0001>
module attributes {stable_mosaic.version = 11 : i64} {
  func.func @_emb_kernel(%arg0: memref<2x64xf32, #tpu.memory_space<vmem>>, %arg1: memref<64x128xf32, #tpu.memory_space<vmem>>, %arg2: memref<1x128xf32, #tpu.memory_space<vmem>>, %arg3: memref<2x128xf32, #tpu.memory_space<vmem>>) attributes {dimension_semantics = [], scalar_prefetch = 0 : i64, scratch_operands = 0 : i64, tpu.core_type = #tpu.core_type<tc>} {
    %c0 = arith.constant 0 : index
    %c0_0 = arith.constant 0 : index
    %0 = vector.load %arg0[%c0, %c0_0] : memref<2x64xf32, #tpu.memory_space<vmem>>, vector<2x64xf32>
    %cst = arith.constant 0.000000e+00 : f32
    %1 = vector.broadcast %cst : f32 to vector<2x64xf32>
    %2 = arith.subf %1, %0 : vector<2x64xf32>
    %3 = math.exp %2 : vector<2x64xf32>
    %cst_1 = arith.constant 1.000000e+00 : f32
    %4 = vector.broadcast %cst_1 : f32 to vector<2x64xf32>
    %5 = arith.addf %4, %3 : vector<2x64xf32>
    %cst_2 = arith.constant 1.000000e+00 : f32
    %6 = vector.broadcast %cst_2 : f32 to vector<2x64xf32>
    %7 = arith.divf %6, %5 : vector<2x64xf32>
    %8 = arith.mulf %0, %7 : vector<2x64xf32>
    %c0_3 = arith.constant 0 : index
    %c0_4 = arith.constant 0 : index
    %9 = vector.load %arg1[%c0_3, %c0_4] : memref<64x128xf32, #tpu.memory_space<vmem>>, vector<64x128xf32>
    %cst_5 = arith.constant dense<0.000000e+00> : vector<2x128xf32>
    %10 = tpu.matmul %8, %9, %cst_5 {dimension_numbers = #tpu.dot_dimension_numbers<[1], [0], [0], [1], [0, 0, 1, 1], [], []>} : vector<2x64xf32>, vector<64x128xf32>, vector<2x128xf32> -> vector<2x128xf32>
    %c0_6 = arith.constant 0 : index
    %c0_7 = arith.constant 0 : index
    %11 = vector.load %arg2[%c0_6, %c0_7] : memref<1x128xf32, #tpu.memory_space<vmem>>, vector<1x128xf32>
    %12 = vector.broadcast %11 : vector<1x128xf32> to vector<2x128xf32>
    %13 = arith.addf %10, %12 : vector<2x128xf32>
    %c0_8 = arith.constant 0 : index
    %c0_9 = arith.constant 0 : index
    %14 = vector.load %arg3[%c0_8, %c0_9] : memref<2x128xf32, #tpu.memory_space<vmem>>, vector<2x128xf32>
    tpu.vector_store %arg3[%c0_8, %c0_9], %13 {strides = array<i32>} : memref<2x128xf32, #tpu.memory_space<vmem>>, vector<2x128xf32>,
    return
  }
}

</mosaic_0001>

<bundles_post_ra>
// kernel: tpu_custom_call.1
= control target key start
LH: loop header
LB: loop body
LE: loop exit
PB: predicated region body
PF: predicated region fallthrough
CT: control target
= control target key end

     0   :  { %8 = vsyncpa [#allocation3], 0  ;;  %s247_s0 = inlined_call_operand.hbm [shape: f32[2,64], index: 0, kind: input, shape index: {}]   ;;  %s248_s1 = inlined_call_operand.hbm [shape: f32[64,128], index: 1, kind: input, shape index: {}]   ;;  %s249_s2 = inlined_call_operand.vmem [shape: f32[1,128], index: 2, kind: input, shape index: {}]   ;;  %s250_s3 = inlined_call_operand.hbm [shape: f32[2,128], index: 3, kind: output, shape index: {}]  }
   0x1   :  { %9 = vsyncpa [#allocation6], 0 }
   0x2   :  { %10 = vsyncpa [#allocation4], 0  ;;  %s16_s14 = sshll.u32 %s247_s0, 4  ;;  %s210_s15 = smov [#allocation2]   ;;  %s17_s14 = int_to_ptr.hbm [resolvable:$true] %s16_s14 }
   0x3   :  { %s18_s16 = sshll.u32 %s210_s15, 4  ;;  %s26_s19 = sshll.u32 %s248_s1, 4  ;;  %s19_s16 = int_to_ptr.vmem [resolvable:$true] %s18_s16  ;;  %s27_s19 = int_to_ptr.hbm [resolvable:$true] %s26_s19 }
   0x4   :  { %21 = dma.hbm_to_vmem [thread:$0]  %s17_s14, 32, %s19_s16, [#allocation3]  }
   0x5   :  { %s211_s20 = smov [#allocation5]   ;;  %s212_s22 = smov 128  }
   0x6   :  { %s28_s21 = sshll.u32 %s211_s20, 4  ;;  %s213_s23 = smov 8   ;;  %s29_s21 = int_to_ptr.vmem [resolvable:$true] %s28_s21 }
   0x7   :  { %34 = dma.hbm_to_vmem [thread:$0]  %s27_s19, 1024, %s29_s21, [#allocation6], %s212_s22, %s212_s22, %s213_s23  }
   0x8   :  { %204 = dma.done.wait [#allocation3], 32  }
   0x9   :  { %205 = vsyncadd [#allocation3], 4294967264 }
   0xa   :  { %206 = dma.done.wait [#allocation6], 1024  }
   0xb   :  { %207 = vsyncadd [#allocation6], 4294966272  ;;  %v73_v0 = vld [vmem:[#allocation5 + $0x38] sm:$0xff]  ;;  %v72_v1 = vld [vmem:[#allocation5 + $0x30] sm:$0xff]  ;;  %vm78_vm4 = vcmask 523264   ;;  %s214_s24 = smov [#allocation7]  }
   0xc   :  { %90 = vmatpush.msra.mxu0 %v73_v0  ;;  %v71_v2 = vld [vmem:[#allocation5 + $0x28] sm:$0xff]  ;;  %v45_v3 = vld [vmem:[#allocation2] sm:$0x3]  ;;  %v70_v5 = vld [vmem:[#allocation5 + $0x20] sm:$0xff]  ;;  %s108_s25 = sshll.u32 %s214_s24, 4  ;;  %s110_s28 = sshll.u32 %s250_s3, 4  ;;  %s109_s25 = int_to_ptr.vmem [resolvable:$true] %s108_s25  ;;  %s111_s28 = int_to_ptr.hbm [resolvable:$true] %s110_s28 }
   0xd   :  { %v46_v4 = vsub.f32 0.0, %v45_v3  ;;  %v69_v7 = vld [vmem:[#allocation5 + $0x18] sm:$0xff]  ;;  %v68_v8 = vld [vmem:[#allocation5 + $0x10] sm:$0xff]  ;;  %v67_v9 = vld [vmem:[#allocation5 + $0x8] sm:$0xff] }
   0xe   :  { %91 = vmatpush.msra.mxu0 %v72_v1  ;;  %v66_v10 = vld [vmem:[#allocation5] sm:$0xff]  ;;  %v127_v24 = vld [vmem:[%s249_s2] ss:$0 sm:$0xff] }
   0xf   :  { %v47_v6 = vmul.f32 1.442695, %v46_v4 }
  0x10   :  { %92 = vmatpush.msra.mxu0 %v71_v2 }
  0x11   :  { %128 = vpow2.f32 %v47_v6 }
  0x12   :  { %93 = vmatpush.msra.mxu0 %v70_v5 }
  0x14   :  { %94 = vmatpush.msra.mxu0 %v69_v7 }
  0x16   :  { %95 = vmatpush.msra.mxu0 %v68_v8 }
  0x17   :  { %v129_v11 = vpop.eup %128 }
  0x18   :  { %96 = vmatpush.msra.mxu0 %v67_v9  ;;  %v49_v12 = vadd.f32 1.0, %v129_v11 }
  0x1a   :  { %97 = vmatpush.msra.mxu0 %v66_v10  ;;  %130 = vrcp.f32 %v49_v12  ;;  %v61_v15 = vand.u32 2147483648, %v49_v12  ;;  %vm55_vm0 = vweird.f32 %v49_v12  ;;  %v59_v17 = vand.u32 2147483647, %v49_v12 }
  0x1c   :  { %v62_v19 = vor.u32 1.1754944e-38, %v61_v15  ;;  %vm60_vm3 = vcmp.eq.f32.partialorder %v59_v17, 8.507059e+37 }
  0x20   :  { %v131_v13 = vpop.eup %130 }
  0x21   :  { %v51_v14 = vmul.f32 %v131_v13, %v49_v12  ;;  %vm56_vm1 = vweird.f32 %v131_v13 }
  0x22   :  { %vm57_vm2 = vmor %vm55_vm0, %vm56_vm1 }
  0x23   :  { %v52_v16 = vsub.f32 1.0, %v51_v14 }
  0x25   :  { %v53_v18 = vmul.f32 %v131_v13, %v52_v16 }
  0x27   :  { %v54_v20 = vadd.f32 %v131_v13, %v53_v18 }
  0x29   :  { %v58_v21 = vsel %vm57_vm2, %v131_v13, %v54_v20 }
  0x2a   :  { %v63_v22 = vsel %vm60_vm3, %v62_v19, %v58_v21 }
  0x2b   :  { %v65_v23 = vmul.f32 %v63_v22, %v45_v3 }
  0x2d   :  { %121 = vmatmul.msk.f32.vlgmr.msra.gmra.mxu0 %vm78_vm4, %v65_v23 }
  0xaa   :  { %v99_v25 = vpop.f32.mrf.mxu0 }
  0xab   :  { %v100_v26 = vadd.f32 %v127_v24, %v99_v25 }
  0xad   :  { %102 = vst [vmem:[#allocation7] sm:$0x3] %v100_v26 }
  0xae   :  { %113 = dma.vmem_to_hbm [thread:$0]  %s109_s25, 32, %s111_s28, [#allocation4]  }
  0xaf   :  { %208 = dma.done.wait [#allocation4], 32  }
  0xb0   :  { %209 = vsyncadd [#allocation4], 4294967264 }
  0xb1   :  { %118 = vsyncpa [#allocation3], 1 }
  0xb2   :  { %119 = vsyncpa [#allocation6], 1 }
  0xb3   :  { %120 = vsyncpa [#allocation4], 1 }

</bundles_post_ra>
